<compile_context>
chip_gen: v6e
topology: v6e:2x2x1
jax: 0.10.0
libtpu: 0.0.40
codegen_flags: <defaults>
</compile_context>

<pallas_src>
import math
import functools

import jax
import jax.numpy as jnp
from jax.experimental import pallas as pl
from jax.experimental.pallas import tpu as pltpu


def _round_up(x: int, m: int) -> int:
    return ((x + m - 1) // m) * m


def _pick_tile(dim: int, max_tile: int, align: int) -> int:
    """Largest multiple of `align` <= max_tile that divides round_up(dim, align)."""
    dp = _round_up(max(dim, 1), align)
    max_tile = max(align, min(max_tile, dp))
    best = align
    for t in range(align, max_tile + 1, align):
        if dp % t == 0:
            best = t
    return best


@functools.lru_cache(maxsize=None)
def _vmem_limit_bytes() -> int:
    """Per-generation VMEM limit for the pallas_call (v7x has only 64 MiB/core)."""
    try:
        cap = int(pltpu.get_tpu_info().vmem_capacity_bytes)
    except Exception:
        cap = 64 * 1024 * 1024  # assume the smallest generation if unknown
    return int(min(cap * 3 // 4, 96 * 1024 * 1024))


def _gcn_fused_kernel(adj_ref, x_ref, w_ref, o_ref, acc_ref):
    """One (tm, tn) output tile of adj @ (x @ w); k (node/reduction axis) is last."""
    k = pl.program_id(2)

    @pl.when(k == 0)
    def _zero():
        acc_ref[...] = jnp.zeros_like(acc_ref)

    # On-the-fly projection of this K-slab of node features: (tk, Fin)@(Fin, tn).
    # Tiny vs. the adjacency contraction (flop ratio ~ F_in / tm) and it keeps
    # `support` entirely in VMEM -- it is never written to / re-read from HBM.
    support = jnp.dot(x_ref[...], w_ref[...], preferred_element_type=jnp.float32)
    acc_ref[...] += jnp.dot(
        adj_ref[...],
        support.astype(adj_ref.dtype),
        preferred_element_type=jnp.float32,
    )

    @pl.when(k == pl.num_programs(2) - 1)
    def _store():
        o_ref[...] = acc_ref[...].astype(o_ref.dtype)


def _pick_tiles(n, f_in, f_out, compute_dtype, out_dtype, tm_max, tn_max, tk_max):
    fin_p = _round_up(f_in, 128)
    fout_p = _round_up(f_out, 128)
    mp = _round_up(n, 8)
    kp = _round_up(n, 128)

    tn = _pick_tile(f_out, tn_max, 128)
    tk = _pick_tile(n, tk_max, 128)
    tm = _pick_tile(n, tm_max, 8)
    # Keep >= 2 steps on the parallel i axis (v7x has 2 TensorCores per chip).
    if mp // tm < 2 and mp >= 16:
        tm = _pick_tile(n, mp // 2, 8)

    cdt = jnp.dtype(compute_dtype).itemsize
    odt = jnp.dtype(out_dtype).itemsize

    def working_set(tm_, tk_, tn_):
        return (2 * tm_ * tk_ * cdt        # adj tile (double-buffered)
                + 2 * tk_ * fin_p * cdt    # x tile (double-buffered)
                + 2 * fin_p * tn_ * cdt    # weight tile (double-buffered)
                + 2 * tm_ * tn_ * odt      # output tile (double-buffered)
                + tm_ * tn_ * 4            # f32 accumulator scratch
                + tk_ * tn_ * 4)           # in-kernel f32 support temporary

    budget = (_vmem_limit_bytes() * 3) // 4
    while working_set(tm, tk, tn) > budget and tk > 128:
        tk = _pick_tile(n, tk - 128, 128)
    while working_set(tm, tk, tn) > budget and tm > 8:
        tm = _pick_tile(n, tm - 8, 8)

    return tm, tn, tk, mp, kp, fin_p, fout_p


def prepare_adjacency(adj, compute_dtype=jnp.bfloat16):
    """One-time cast + (8,128)-legality pad of the adjacency.

    The adjacency is typically reused across layers / training iterations;
    preparing it once avoids an extra full N^2 cast+pad HBM pass per layer.
    """
    n = adj.shape[0]
    mp, kp = _round_up(n, 8), _round_up(n, 128)
    return jnp.pad(adj.astype(compute_dtype), ((0, mp - n), (0, kp - n)))


@functools.partial(
    jax.jit,
    static_argnames=("out_dtype", "compute_dtype", "tm_max", "tn_max", "tk_max"),
)
def graph_convolution(
    x,
    adj,
    weight,
    *,
    out_dtype=jnp.float32,
    compute_dtype=jnp.bfloat16,
    tm_max=1024,
    tn_max=512,
    tk_max=2048,
):
    """GCN layer forward: adj @ (x @ weight), no bias. One fused Pallas kernel.

    `adj` may be the raw [N, N] matrix or the output of prepare_adjacency().
    """
    n, f_in = x.shape
    f_out = weight.shape[1]

    tm, tn, tk, mp, kp, fin_p, fout_p = _pick_tiles(
        n, f_in, f_out, compute_dtype, out_dtype, tm_max, tn_max, tk_max
    )

    if adj.shape == (mp, kp):
        adj_p = adj.astype(compute_dtype)  # already prepared once by the caller
    else:
        assert adj.shape == (n, n), adj.shape
        adj_p = jnp.pad(adj.astype(compute_dtype), ((0, mp - n), (0, kp - n)))

    # x is the K-side operand of the adjacency contraction: pad rows to kp.
    x_p = jnp.pad(x.astype(compute_dtype), ((0, kp - n), (0, fin_p - f_in)))
    w_p = jnp.pad(
        weight.astype(compute_dtype), ((0, fin_p - f_in), (0, fout_p - f_out))
    )

    grid = (mp // tm, fout_p // tn, kp // tk)

    cdt = jnp.dtype(compute_dtype).itemsize
    cost = pl.CostEstimate(
        flops=2 * mp * kp * fout_p + 2 * grid[0] * kp * fin_p * fout_p,
        transcendentals=0,
        bytes_accessed=(
            mp * kp * cdt                                  # adj (read once)
            + grid[0] * grid[1] * kp * fin_p * cdt         # x (re-read per i,j)
            + fin_p * fout_p * cdt                         # weight
            + mp * fout_p * jnp.dtype(out_dtype).itemsize  # output
        ),
    )

    out_p = pl.pallas_call(
        _gcn_fused_kernel,
        out_shape=jax.ShapeDtypeStruct((mp, fout_p), out_dtype),
        grid_spec=pltpu.PrefetchScalarGridSpec(
            num_scalar_prefetch=0,
            grid=grid,
            in_specs=[
                pl.BlockSpec((tm, tk), lambda i, j, k: (i, k)),     # adj
                pl.BlockSpec((tk, fin_p), lambda i, j, k: (k, 0)),  # x
                pl.BlockSpec((fin_p, tn), lambda i, j, k: (0, j)),  # weight
            ],
            out_specs=pl.BlockSpec((tm, tn), lambda i, j, k: (i, j)),
            scratch_shapes=[pltpu.VMEM((tm, tn), jnp.float32)],
        ),
        compiler_params=pltpu.CompilerParams(
            dimension_semantics=("parallel", "parallel", "arbitrary"),
            vmem_limit_bytes=_vmem_limit_bytes(),
        ),
        cost_estimate=cost,
    )(adj_p, x_p, w_p)

    return out_p[:n, :f_out]


def init_weight(key, in_features, out_features, dtype=jnp.float32):
    # Mirrors torch kaiming_normal_(mode='fan_out', nonlinearity='relu') on a
    # (in_features, out_features) tensor: for 2D tensors torch uses
    # fan_out = size(0) = in_features, gain = sqrt(2).
    fan_out = in_features
    std = math.sqrt(2.0) / math.sqrt(fan_out)
    return std * jax.random.normal(key, (in_features, out_features), dtype=dtype)


if __name__ == "__main__":
    key = jax.random.PRNGKey(0)
    k_x, k_adj, k_w = jax.random.split(key, 3)

    N, F_IN, F_OUT = 16, 8, 32  # small graph: 16 nodes, 8 -> 32 features

    x = jax.random.normal(k_x, (N, F_IN), dtype=jnp.float32)
    adj_raw = jax.random.uniform(k_adj, (N, N), dtype=jnp.float32)
    adj = (adj_raw + adj_raw.T) * 0.5  # symmetric adjacency-like matrix
    weight = init_weight(k_w, F_IN, F_OUT)

    # Recommended path: cast+pad the adjacency once, reuse it across layers.
    adj_prep = prepare_adjacency(adj)
    out = jax.block_until_ready(graph_convolution(x, adj_prep, weight))
    assert out.shape == (N, F_OUT)

    # Convenience path (raw f32 adjacency) must produce the same result.
    out_raw = jax.block_until_ready(graph_convolution(x, adj, weight))
    assert jnp.allclose(out, out_raw, atol=1e-6, rtol=1e-6)

    # Reference following the same numeric path (bf16 MXU inputs, f32 accum).
    bf16 = jnp.bfloat16
    ref_support = jnp.dot(
        x.astype(bf16), weight.astype(bf16), preferred_element_type=jnp.float32
    )
    ref = jnp.dot(
        adj.astype(bf16),
        ref_support.astype(bf16),
        preferred_element_type=jnp.float32,
    )
    assert jnp.allclose(out, ref, atol=1e-2, rtol=1e-2), (
        float(jnp.max(jnp.abs(out - ref)))
    )

    # Loose sanity check against the full-f32 math as well.
    ref_f32 = adj @ (x @ weight)
    assert jnp.allclose(out, ref_f32, atol=2e-1, rtol=5e-2)

    print("KERNEL_OK")
</pallas_src>

<mosaic_0001>
module attributes {stable_mosaic.version = 11 : i64} {
  func.func @_gcn_fused_kernel(%arg0: i32, %arg1: i32, %arg2: i32, %arg3: memref<8x128xbf16, #tpu.memory_space<vmem>>, %arg4: memref<128x128xbf16, #tpu.memory_space<vmem>>, %arg5: memref<128x128xbf16, #tpu.memory_space<vmem>>, %arg6: memref<8x128xf32, #tpu.memory_space<vmem>>, %arg7: memref<8x128xf32, #tpu.memory_space<vmem>>) attributes {dimension_semantics = [#tpu.dimension_semantics<parallel>, #tpu.dimension_semantics<parallel>, #tpu.dimension_semantics<arbitrary>], iteration_bounds = array<i64: 2, 1, 1>, scalar_prefetch = 0 : i64, scratch_operands = 1 : i64, tpu.core_type = #tpu.core_type<tc>, window_params = [{transform_indices = @transform_0, window_bounds = array<i64: 8, 128>}, {transform_indices = @transform_1, window_bounds = array<i64: 128, 128>}, {transform_indices = @transform_2, window_bounds = array<i64: 128, 128>}, {transform_indices = @transform_3, window_bounds = array<i64: 8, 128>}]} {
    %c0_i32 = arith.constant 0 : i32
    %0 = arith.cmpi eq, %arg2, %c0_i32 : i32
    %1 = arith.extui %0 : i1 to i32
    %c0_i32_0 = arith.constant 0 : i32
    %2 = arith.cmpi ne, %1, %c0_i32_0 : i32
    scf.if %2 {
      %cst_13 = arith.constant 0.000000e+00 : f32
      %15 = vector.broadcast %cst_13 : f32 to vector<8x128xf32>
      %c0_14 = arith.constant 0 : index
      %c0_15 = arith.constant 0 : index
      %16 = vector.load %arg7[%c0_14, %c0_15] : memref<8x128xf32, #tpu.memory_space<vmem>>, vector<8x128xf32>
      tpu.vector_store %arg7[%c0_14, %c0_15], %15 {strides = array<i32>} : memref<8x128xf32, #tpu.memory_space<vmem>>, vector<8x128xf32>,
    } else {
    }
    %c0 = arith.constant 0 : index
    %c0_1 = arith.constant 0 : index
    %3 = vector.load %arg4[%c0, %c0_1] : memref<128x128xbf16, #tpu.memory_space<vmem>>, vector<128x128xbf16>
    %c0_2 = arith.constant 0 : index
    %c0_3 = arith.constant 0 : index
    %4 = vector.load %arg5[%c0_2, %c0_3] : memref<128x128xbf16, #tpu.memory_space<vmem>>, vector<128x128xbf16>
    %cst = arith.constant dense<0.000000e+00> : vector<128x128xf32>
    %5 = tpu.matmul %3, %4, %cst {dimension_numbers = #tpu.dot_dimension_numbers<[1], [0], [0], [1], [0, 0, 1, 1], [], []>} : vector<128x128xbf16>, vector<128x128xbf16>, vector<128x128xf32> -> vector<128x128xf32>
    %c0_4 = arith.constant 0 : index
    %c0_5 = arith.constant 0 : index
    %6 = vector.load %arg7[%c0_4, %c0_5] : memref<8x128xf32, #tpu.memory_space<vmem>>, vector<8x128xf32>
    %c0_6 = arith.constant 0 : index
    %c0_7 = arith.constant 0 : index
    %7 = vector.load %arg3[%c0_6, %c0_7] : memref<8x128xbf16, #tpu.memory_space<vmem>>, vector<8x128xbf16>
    %8 = arith.truncf %5 : vector<128x128xf32> to vector<128x128xbf16>
    %cst_8 = arith.constant dense<0.000000e+00> : vector<8x128xf32>
    %9 = tpu.matmul %7, %8, %cst_8 {dimension_numbers = #tpu.dot_dimension_numbers<[1], [0], [0], [1], [0, 0, 1, 1], [], []>} : vector<8x128xbf16>, vector<128x128xbf16>, vector<8x128xf32> -> vector<8x128xf32>
    %10 = arith.addf %6, %9 : vector<8x128xf32>
    %c0_9 = arith.constant 0 : index
    %c0_10 = arith.constant 0 : index
    %11 = vector.load %arg7[%c0_9, %c0_10] : memref<8x128xf32, #tpu.memory_space<vmem>>, vector<8x128xf32>
    tpu.vector_store %arg7[%c0_9, %c0_10], %10 {strides = array<i32>} : memref<8x128xf32, #tpu.memory_space<vmem>>, vector<8x128xf32>,
    %c0_i32_11 = arith.constant 0 : i32
    %12 = arith.cmpi eq, %arg2, %c0_i32_11 : i32
    %13 = arith.extui %12 : i1 to i32
    %c0_i32_12 = arith.constant 0 : i32
    %14 = arith.cmpi ne, %13, %c0_i32_12 : i32
    scf.if %14 {
      %c0_13 = arith.constant 0 : index
      %c0_14 = arith.constant 0 : index
      %15 = vector.load %arg7[%c0_13, %c0_14] : memref<8x128xf32, #tpu.memory_space<vmem>>, vector<8x128xf32>
      %c0_15 = arith.constant 0 : index
      %c0_16 = arith.constant 0 : index
      %16 = vector.load %arg6[%c0_15, %c0_16] : memref<8x128xf32, #tpu.memory_space<vmem>>, vector<8x128xf32>
      tpu.vector_store %arg6[%c0_15, %c0_16], %15 {strides = array<i32>} : memref<8x128xf32, #tpu.memory_space<vmem>>, vector<8x128xf32>,
    } else {
    }
    return
  }
  func.func @transform_0(%arg0: i32, %arg1: i32, %arg2: i32) -> (i32, i32) {
    %c0_i32 = arith.constant 0 : i32
    return %arg0, %arg2 : i32, i32
  }
  func.func @transform_1(%arg0: i32, %arg1: i32, %arg2: i32) -> (i32, i32) {
    %c0_i32 = arith.constant 0 : i32
    %c0_i32_0 = arith.constant 0 : i32
    return %arg2, %c0_i32 : i32, i32
  }
  func.func @transform_2(%arg0: i32, %arg1: i32, %arg2: i32) -> (i32, i32) {
    %c0_i32 = arith.constant 0 : i32
    %c0_i32_0 = arith.constant 0 : i32
    return %c0_i32, %arg1 : i32, i32
  }
  func.func @transform_3(%arg0: i32, %arg1: i32, %arg2: i32) -> (i32, i32) {
    %c0_i32 = arith.constant 0 : i32
    return %arg0, %arg1 : i32, i32
  }
}

</mosaic_0001>

<bundles_post_ra>
// kernel: graph_convolution.1
= control target key start
LH: loop header
LB: loop body
LE: loop exit
PB: predicated region body
PF: predicated region fallthrough
CT: control target
= control target key end

     0   :  { %8 = vsyncpa [#allocation4], 0  ;;  %s1083_s0 = inlined_call_operand.vmem [shape: bf16[16,128], index: 0, kind: input, shape index: {}]   ;;  %s1084_s1 = inlined_call_operand.vmem [shape: bf16[128,128], index: 1, kind: input, shape index: {}]   ;;  %s1085_s2 = inlined_call_operand.vmem [shape: bf16[128,128], index: 2, kind: input, shape index: {}]   ;;  %s1086_s3 = inlined_call_operand.hbm [shape: f32[16,128], index: 3, kind: output, shape index: {}]  }
   0x1   :  { %10 = vsyncpa [#allocation4 + $0x1], 0  ;;  %s924_s12 = smov 0   ;;  %s926_s13 = smov 0  }
   0x2   :  { %s928_s14 = smov 0   ;;  %s930_s15 = smov 0  }
   0x3   :  { %s932_s16 = smov 0   ;;  %s934_s17 = smov 0  }
   0x4 LB: > { %s644_s18 = sadd.s32 4294967295, %s899_s17   ;;  %s645_s19 = sadd.s32 4294967294, %s899_s17   ;;  %s899_s17 = sphi %s934_s17, %s16_s17   ;;  %s895_s16 = sphi %s932_s16, %s1093_s16   ;;  %s891_s15 = sphi %s930_s15, %s1092_s15   ;;  %s887_s14 = sphi %s928_s14, %s1091_s14   ;;  %s883_s13 = sphi %s926_s13, %s1090_s13   ;;  %s879_s12 = sphi %s924_s12, %s1089_s12  }
   0x5   : > { %s35_s20 = sadd.s32 1, %s895_s16  ;;  %s124_s21 = sadd.s32 1, %s887_s14 }
   0x6   : > { %p37_p0 = scmp.ge.s32.totalorder %s35_s20, 2  ;;  %p134_p1 = scmp.ne.s32.totalorder %s887_s14, %s883_s13 }
   0x7   : > { %p135_p2 = scmp.eq.s32.totalorder %s644_s18, 1  ;;  %p140_p3 = scmp.ne.s32.totalorder %s883_s13, %s879_s12 }
   0x8   : > { %s1095_s20 = smov (%p37_p0, %s35_s20), 0  ;;  %p141_p5 = scmp.eq.s32.totalorder %s645_s19, 1 }
   0x9   : > { %p964_p4 = por %p135_p2, %p134_p1  ;;  %s119_s23 = ssub.s32 %s895_s16, %s1095_s20 }
   0xa   : > { %p650_p6 = scmp.ge.s32.totalorder %s899_s17, 1  ;;  %p122_p7 = scmp.eq.s32.totalorder %s119_s23, 0 }
   0xb   : > { %p971_p8 = por %p141_p5, %p140_p3  ;;  %p185_p9 = scmp.lt.s32.totalorder %s899_s17, 3 }
   0xc   : > { %s977_s25 = scalar_select %p122_p7, %s887_s14, %s124_s21  }
   0xd   : > { %p186_p10 = pnand %p650_p6, %p185_p9 }
   0xe   : > { %p220_p11 = scmp.lt.s32.totalorder (!%p186_p10), %s891_s15, 1  ;;  %s217_s29 = sand.u32 (!%p186_p10), 1, %s883_s13  }
   0xf   : > { %189 = sbr.rel (%p186_p10) target bundleno = 516 (0x204), region = 32  ;;  %s651_s30 = sshll.u32 (!%p186_p10), %s217_s29, 3 }
  0x10   : > { %s219_s4 = scalar_lea.vmem (!%p186_p10), [#allocation3], %s651_s30  ;;  %s670_s6 = sshll.u32 (!%p186_p10), %s891_s15, 7 }
  0x11   : > { %s540_s5 = sshll.u32 (!%p186_p10), %s219_s4, 4  ;;  %s1039_s9 = scalar_lea.hbm (!%p186_p10), %s1086_s3, %s670_s6  ;;  %s1034_s5 = int_to_ptr.vmem [resolvable:$true] %s540_s5 }
  0x12   : > { %s526_s10 = scalar_lea.sflag (!%p186_p10), [#allocation4], %s217_s29  ;;  %s823_s11 = scalar_lea.vmem (!%p186_p10), %s1034_s5, 128 }
  0x13   : > { %p824_p12 = scmp.ne.s32.totalorder (!%p186_p10), %s1034_s5, %s823_s11 }
  0x14   : > { %v807_v0 = vld [vmem:[%s1085_s2 + $0x38] sm:$0xff]   ;;  %v808_v1 = vld [vmem:[%s1085_s2 + $0x30] sm:$0xff]   ;;  %v809_v2 = vld [vmem:[%s1085_s2 + $0x28] sm:$0xff]   ;;  %v901_v16 = vmov 0.0   ;;  %vm902_vm0 = vmmov 0   ;;  %s221_s21 = scalar_select %p220_p11, %s891_s15, 1 }
  0x15   : > { %698 = vmatprep.subr.bf16.mxu0 %v807_v0  ;;  %v810_v3 = vld [vmem:[%s1085_s2 + $0x20] sm:$0xff]   ;;  %v811_v5 = vld [vmem:[%s1085_s2 + $0x18] sm:$0xff]   ;;  %v812_v6 = vld [vmem:[%s1085_s2 + $0x10] sm:$0xff]   ;;  %730 = vmatprep.subr.bf16.mxu1 %v901_v16  ;;  %p825_p13 = pnand %p824_p12, %p964_p4  ;;  %s903_s15 = smov [#allocation3]  }
  0x16   : > { %699 = vmatpush3.bf16.msra.mxu0 %v807_v0  ;;  %v815_v4 = vld [vmem:[%s1084_s1] sm:$0xff]   ;;  %v813_v7 = vld [vmem:[%s1085_s2 + $0x8] sm:$0xff]   ;;  %v817_v10 = vld [vmem:[%s1084_s1 + $0x10] sm:$0xff]   ;;  %746 = vmatprep.mubr.msk.bf16.mxu1 %vm902_vm0, %v901_v16  ;;  %s652_s23 = sshll.u32 %s221_s21, 2  ;;  %s827_s18 = sshll.u32 %s903_s15, 4  ;;  %s828_s18 = int_to_ptr.vmem [resolvable:$false] %s827_s18 }
  0x17   : > { %700 = vmatprep.subr.bf16.mxu0 %v808_v1  ;;  %714 = vmatprep.mubr.bf16.mxu0 %v815_v4  ;;  %v814_v8 = vld [vmem:[%s1085_s2] sm:$0xff]   ;;  %v816_v9 = vld [vmem:[%s1084_s1 + $0x8] sm:$0xff]   ;;  %v818_v11 = vld [vmem:[%s1084_s1 + $0x18] sm:$0xff]   ;;  %s226_s28 = scalar_lea.vmem %s1083_s0, %s652_s23  ;;  %p826_p0 = pneg %p825_p13 }
  0x18   : > { %v819_v12 = vld [vmem:[%s1084_s1 + $0x20] sm:$0xff]   ;;  %v820_v13 = vld [vmem:[%s1084_s1 + $0x28] sm:$0xff]   ;;  %v821_v14 = vld [vmem:[%s1084_s1 + $0x30] sm:$0xff]   ;;  %s829_s19 = scalar_lea.vmem %s828_s18, 256  ;;  %p830_p1 = scmp.lt.s32.totalorder %s1034_s5, %s828_s18 }
  0x19   : > { %v822_v15 = vld [vmem:[%s1084_s1 + $0x38] sm:$0xff]   ;;  %v469_v41 = vld [vmem:[%s226_s28] sm:$0xf]  ;;  %p831_p2 = scmp.lt.s32.totalorder %s829_s19, %s823_s11 }
  0x1a   : > { %701 = vmatpush3.bf16.msra.mxu0 %v808_v1 }
  0x1b   : > { %702 = vmatprep.subr.bf16.mxu0 %v809_v2  ;;  %p832_p3 = por %p831_p2, %p830_p1 }
  0x1d   : > { %p833_p5 = pnand %p832_p3, %p826_p0 }
  0x1e   : > { %703 = vmatpush3.bf16.msra.mxu0 %v809_v2 }
  0x1f   : > { %704 = vmatprep.subr.bf16.mxu0 %v810_v3 }
  0x22   : > { %705 = vmatpush3.bf16.msra.mxu0 %v810_v3 }
  0x23   : > { %706 = vmatprep.subr.bf16.mxu0 %v811_v5 }
  0x26   : > { %707 = vmatpush3.bf16.msra.mxu0 %v811_v5 }
  0x27   : > { %708 = vmatprep.subr.bf16.mxu0 %v812_v6 }
  0x2a   : > { %709 = vmatpush3.bf16.msra.mxu0 %v812_v6 }
  0x2b   : > { %710 = vmatprep.subr.bf16.mxu0 %v813_v7 }
  0x2e   : > { %711 = vmatpush3.bf16.msra.mxu0 %v813_v7 }
  0x2f   : > { %712 = vmatprep.subr.bf16.mxu0 %v814_v8 }
  0x32   : > { %713 = vmatpush3.bf16.msra.mxu0 %v814_v8 }
  0x35   : > { %715 = vmatmul.mubr.bf16.vlgmr.msra.gmra.mxu0 %v816_v9 }
  0x36   : > { %718 = vmatprep.mubr.bf16.mxu0 %v817_v10 }
  0x3d   : > { %719 = vmatmul.mubr.bf16.gmra.mxu0 %v818_v11 }
  0x3e   : > { %722 = vmatprep.mubr.bf16.mxu0 %v819_v12 }
  0x45   : > { %723 = vmatmul.mubr.bf16.gmra.mxu0 %v820_v13 }
  0x46   : > { %726 = vmatprep.mubr.bf16.mxu0 %v821_v14 }
  0x4d   : > { %727 = vmatmul.mubr.bf16.gmra.mxu0 %v822_v15 }
  0xf5   : > { %v716_v17 = vpop.f32.mrf.mxu0 }
  0xf7   : > { %v405_v18 = vpop.f32.mrf.mxu0 }
  0xf9   : > { %v717_v19 = vpop.f32.mrf.mxu0 }
  0xfa   : > { %v471_v39 = vpack.c.bf16 %v717_v19, %v716_v17 }
  0xfb   : > { %v408_v20 = vpop.f32.mrf.mxu0 }
  0xfc   : > { %v470_v40 = vpack.c.bf16 %v408_v20, %v405_v18 }
  0xfd   : > { %v720_v21 = vpop.f32.mrf.mxu0 }
  0xff   : > { %v421_v22 = vpop.f32.mrf.mxu0 }
 0x101   : > { %v721_v23 = vpop.f32.mrf.mxu0 }
 0x102   : > { %v473_v37 = vpack.c.bf16 %v721_v23, %v720_v21 }
 0x103   : > { %v424_v24 = vpop.f32.mrf.mxu0 }
 0x104   : > { %v472_v38 = vpack.c.bf16 %v424_v24, %v421_v22 }
 0x105   : > { %v724_v25 = vpop.f32.mrf.mxu0 }
 0x107   : > { %v437_v26 = vpop.f32.mrf.mxu0 }
 0x109   : > { %v725_v27 = vpop.f32.mrf.mxu0 }
 0x10a   : > { %v475_v35 = vpack.c.bf16 %v725_v27, %v724_v25 }
 0x10b   : > { %v440_v28 = vpop.f32.mrf.mxu0 }
 0x10c   : > { %v474_v36 = vpack.c.bf16 %v440_v28, %v437_v26 }
 0x10d   : > { %v728_v29 = vpop.f32.mrf.mxu0 }
 0x10f   : > { %v453_v30 = vpop.f32.mrf.mxu0 }
 0x111   : > { %v729_v31 = vpop.f32.mrf.mxu0 }
 0x112   : > { %v477_v32 = vpack.c.bf16 %v729_v31, %v728_v29 }
 0x113   : > { %v456_v33 = vpop.f32.mrf.mxu0 }
 0x114   : > { %731 = vmatpush3.bf16.msra.mxu1 %v477_v32  ;;  %v476_v34 = vpack.c.bf16 %v456_v33, %v453_v30 }
 0x115   : > { %732 = vmatprep.subr.bf16.mxu1 %v901_v16 }
 0x118   : > { %733 = vmatpush3.bf16.msra.mxu1 %v476_v34 }
 0x119   : > { %734 = vmatprep.subr.bf16.mxu1 %v901_v16 }
 0x11c   : > { %735 = vmatpush3.bf16.msra.mxu1 %v475_v35 }
 0x11d   : > { %736 = vmatprep.subr.bf16.mxu1 %v901_v16 }
 0x120   : > { %737 = vmatpush3.bf16.msra.mxu1 %v474_v36 }
 0x121   : > { %738 = vmatprep.subr.bf16.mxu1 %v901_v16 }
 0x124   : > { %739 = vmatpush3.bf16.msra.mxu1 %v473_v37 }
 0x125   : > { %740 = vmatprep.subr.bf16.mxu1 %v901_v16 }
 0x128   : > { %741 = vmatpush3.bf16.msra.mxu1 %v472_v38 }
 0x129   : > { %742 = vmatprep.subr.bf16.mxu1 %v901_v16 }
 0x12c   : > { %743 = vmatpush3.bf16.msra.mxu1 %v471_v39 }
 0x12d   : > { %744 = vmatprep.subr.bf16.mxu1 %v901_v16 }
 0x130   : > { %745 = vmatpush3.bf16.msra.mxu1 %v470_v40 }
 0x133   : > { %747 = vmatmul.mubr.bf16.vlgmr.msra.gmra.mxu1 %v469_v41 }
 0x1f3   : > { %v512_v42 = vpop.f32.mrf.mxu1 }
 0x1f4   : > { %524 = vst [vmem:[%s219_s4] sm:$0xff] %v512_v42 }
 0x1f5   : > { %v748_v43 = vpop.f32.mrf.mxu1 }
 0x1f6   : > { %836 = shalt.err (!%p833_p5)
}
 0x1f7   : > { %s837_s21 = scalar_lea.hbm %s1039_s9, 128  ;;  %s841_s27 = scalar_lea.hbm %s1086_s3, 256 }
 0x1f8   : > { %p838_p6 = scmp.ne.s32.totalorder %s1039_s9, %s837_s21  ;;  %p842_p10 = scmp.lt.s32.totalorder %s1039_s9, %s1086_s3 }
 0x1f9   : > { %p843_p11 = scmp.lt.s32.totalorder %s841_s27, %s837_s21 }
 0x1fa   : > { %p839_p7 = pnand %p838_p6, %p964_p4 }
 0x1fb   : > { %p844_p12 = por %p843_p11, %p842_p10 }
 0x1fc   : > { %p840_p9 = pneg %p839_p7 }
 0x1fe   : > { %p845_p13 = pnand %p844_p12, %p840_p9 }
 0x200   : > { %848 = shalt.err (!%p845_p13)
}
 0x201   : > { %750 = dma.vmem_to_hbm [thread:$0]  (%p964_p4), %s1034_s5, 128, %s1039_s9, %s526_s10   ;;  %v515_v44 = vpop.f32.mrf.mxu1 }
 0x203   : > { %v749_v45 = vpop.f32.mrf.mxu1 }
 0x204 PF: > { %p756_p0 = scmp.ge.s32.totalorder %s899_s17, 2  ;;  %s552_s30 = sand.u32 1, %s879_s12  }
 0x205   : > { %s553_s4 = scalar_lea.sflag [#allocation4], %s552_s30 }
 0x206   : > { %p753_p1 = pnand %p756_p0, %p971_p8 }
 0x208   : > { %p754_p2 = pneg %p753_p1 }
 0x20a   : > { %874 = dma.done.wait (%p754_p2), %s553_s4, 128  }
 0x20b   : > { %876 = vsyncadd (%p754_p2), %s553_s4, 4294967168  ;;  %s16_s17 = sadd.s32 1, %s899_s17   ;;  %s1089_s12 = smov %s883_s13 }
 0x20c   : > { %p13_p3 = scmp.ge.s32.totalorder %s16_s17, 4   ;;  %s1090_s13 = smov %s887_s14 }
 0x20d   : > { %s1091_s14 = smov %s977_s25  ;;  %s1092_s15 = smov %s895_s16 }
 0x20e   : > { %s1093_s16 = smov %s1095_s20  ;;  %15 = sbr.rel (!%p13_p3) target bundleno = 4 (0x4), region = 81 }
 0x213   :  { %558 = vsyncpa [#allocation4], 1 }
 0x214   :  { %560 = vsyncpa [#allocation4 + $0x1], 1 }

</bundles_post_ra>
